<compile_context>
chip_gen: v5e
topology: v5e:2x2
jax: 0.10.0
libtpu: 0.0.40
codegen_flags: <defaults>
</compile_context>

<pallas_src>
import functools

import jax
import jax.numpy as jnp
from jax import lax
from jax.experimental import pallas as pl
from jax.experimental.pallas import tpu as pltpu

SMOOTH = 0.1
LANES = 128


def _pick_tile_rows(rows, num_channels, yp_itemsize, yt_itemsize,
                    target_bytes=8 * 1024 * 1024, max_rows=4096):
    """Row-tile size from the VMEM budget (decoupled from divisibility).

    Overhanging last tiles are handled with an in-kernel index mask, so the
    tile does not have to divide `rows` — no silent collapse to 8-row blocks.
    """
    bytes_per_row = (num_channels * yp_itemsize + yt_itemsize) * LANES
    tr = max(8, (target_bytes // bytes_per_row) // 8 * 8)
    tr = min(tr, max_rows)
    if rows <= tr:
        return rows        # single tile: block == full dims (alignment-free)
    return tr


def _dice_partial_kernel(yp_ref, yt_ref, inter_ref, pt_ref,
                         inter_acc, pt_acc, *, num_channels, tile_rows,
                         tiles_per_split, valid_elems, apply_mask):
    """One (split, batch, row-tile) step.

    yp_ref: (C, TR, 128) VMEM (batch dim squeezed)
    yt_ref: (TR, 128)    VMEM
    inter_ref/pt_ref: (1, 1) VMEM per-(split,batch) partial-sum outputs
    inter_acc/pt_acc: (TR, 128) f32 VMEM scratch accumulators
    """
    r = pl.program_id(2)

    @pl.when(r == 0)
    def _init():
        inter_acc[...] = jnp.zeros_like(inter_acc)
        pt_acc[...] = jnp.zeros_like(pt_acc)

    yp1 = yp_ref[1].astype(jnp.float32)          # (TR, 128) foreground logits
    yt = yt_ref[...].astype(jnp.float32)         # (TR, 128)

    if apply_mask:
        # Global flat pixel index computed from the *unclamped* tile index so
        # that overhang rows, zero-padding, and duplicated (clamped) tiles all
        # contribute exactly zero.
        s = pl.program_id(0)
        tile = s * tiles_per_split + r
        row0 = tile * tile_rows
        row_ids = row0 + lax.broadcasted_iota(jnp.int32, yp1.shape, 0)
        lane_ids = lax.broadcasted_iota(jnp.int32, yp1.shape, 1)
        mask = (row_ids * LANES + lane_ids) < valid_elems
    else:
        mask = None

    # softmax(yp, axis=channels)[1] == 1 / (1 + sum_{c!=1} exp(yp_c - yp_1))
    denom = jnp.ones_like(yp1)
    for c in range(num_channels):                # unrolled; C is small & static
        if c == 1:
            continue
        diff = yp_ref[c].astype(jnp.float32) - yp1
        if mask is not None:
            # Mask BEFORE the exp: unspecified out-of-bounds data stays finite.
            diff = jnp.where(mask, diff, 0.0)
        denom = denom + jnp.exp(diff)
    p1 = 1.0 / denom                             # exact divide (1e-5 tolerance)
    if mask is not None:
        p1 = jnp.where(mask, p1, 0.0)
        yt = jnp.where(mask, yt, 0.0)

    # Elementwise accumulation only (VPU); no per-step scalar reductions.
    inter_acc[...] = inter_acc[...] + p1 * yt
    pt_acc[...] = pt_acc[...] + (p1 + yt)        # merged pred-sum + target-sum

    # One cross-lane/sublane reduction + one narrow store per (split, batch).
    @pl.when(r == pl.num_programs(2) - 1)
    def _finalize():
        inter_ref[...] = jnp.sum(inter_acc[...], keepdims=True)
        pt_ref[...] = jnp.sum(pt_acc[...], keepdims=True)


def _dice_sums_pallas(yp, yt, tile_rows, valid_elems):
    """yp: (N, C, rows, 128), yt: (N, rows, 128) -> (inter, pred_sum+target_sum)."""
    N, C, rows, LN = yp.shape
    num_tiles = pl.cdiv(rows, tile_rows)
    # 2-way split of the row reduction keeps both v7x TensorCores busy for
    # small / odd N (single-TC v5e/v6e: negligible extra cost).
    num_splits = 2 if num_tiles >= 2 else 1
    tiles_per_split = pl.cdiv(num_tiles, num_splits)
    last_tile = num_tiles - 1

    # Mask needed iff the (split x tile x rows x lanes) coverage exceeds the
    # number of valid pixels (overhang, zero-padding, or duplicated tiles).
    apply_mask = (num_splits * tiles_per_split * tile_rows * LANES) != valid_elems

    def yp_map(s, n, r):
        # Clamp so the DMA never starts fully out of bounds; duplicates are
        # zeroed by the in-kernel mask.
        return (n, 0, jnp.minimum(s * tiles_per_split + r, last_tile), 0)

    def yt_map(s, n, r):
        return (n, jnp.minimum(s * tiles_per_split + r, last_tile), 0)

    out_shape = jax.ShapeDtypeStruct((num_splits, N, 1, 1), jnp.float32)
    out_spec = pl.BlockSpec((None, None, 1, 1), lambda s, n, r: (s, n, 0, 0))

    kernel = functools.partial(
        _dice_partial_kernel, num_channels=C, tile_rows=tile_rows,
        tiles_per_split=tiles_per_split, valid_elems=valid_elems,
        apply_mask=apply_mask)

    # Generation-aware-ish VMEM limit: double-buffered inputs + 2 f32 scratch
    # accumulators + margin, clipped to stay well inside v7x's 64 MiB physical.
    in_bytes = tile_rows * LN * (C * yp.dtype.itemsize + yt.dtype.itemsize)
    scratch_bytes = 2 * tile_rows * LN * 4
    vmem_limit = int(min(48 * 1024 * 1024,
                         max(32 * 1024 * 1024,
                             2 * in_bytes + scratch_bytes + (4 << 20))))

    inter_p, pt_p = pl.pallas_call(
        kernel,
        out_shape=(out_shape, out_shape),
        grid_spec=pltpu.PrefetchScalarGridSpec(
            num_scalar_prefetch=0,
            grid=(num_splits, N, tiles_per_split),
            in_specs=[
                pl.BlockSpec((None, C, tile_rows, LN), yp_map),
                pl.BlockSpec((None, tile_rows, LN), yt_map),
            ],
            out_specs=[out_spec, out_spec],
            scratch_shapes=[pltpu.VMEM((tile_rows, LN), jnp.float32)] * 2,
        ),
        compiler_params=pltpu.CompilerParams(
            dimension_semantics=("parallel", "parallel", "arbitrary"),
            vmem_limit_bytes=vmem_limit,
        ),
    )(yp, yt)

    # Tiny cross-(split,batch) reduction of the partials outside the kernel.
    return jnp.sum(inter_p), jnp.sum(pt_p)


@functools.partial(jax.jit, static_argnames=("train_mode", "max_tile_rows"))
def unet_loss(y_true, y_pred, train_mode=True, dice_w=1.0, bce_w=0.0,
              max_tile_rows=4096):
    """JAX/Pallas equivalent of UNetLoss.forward.

    y_true: (N, H, W) target mask (any dtype; cast to f32 in-kernel)
    y_pred: (N, C, H, W) logits (any float dtype; cast to f32 in-kernel)

    Note: dice_w / bce_w are stored but unused by the reference forward(),
    so they are accepted and ignored here as well.
    """
    N, C, H, W = y_pred.shape
    assert C >= 2, "UNetLoss takes softmax channel 1 as foreground (needs C >= 2)"

    L = H * W
    rows = pl.cdiv(L, LANES)

    yp = y_pred.reshape(N, C, L)
    yt = y_true.reshape(N, L)
    padded_len = rows * LANES
    if padded_len != L:
        # Rare fallback (H*W not a multiple of 128): zero-pad the flat length
        # up to a 128 multiple; the in-kernel index mask removes the pad.
        # TODO(synk): this path still rewrites the tensor in HBM once.
        pad = padded_len - L
        yp = jnp.pad(yp, ((0, 0), (0, 0), (0, pad)))
        yt = jnp.pad(yt, ((0, 0), (0, pad)))

    yp = yp.reshape(N, C, rows, LANES)
    yt = yt.reshape(N, rows, LANES)

    tile_rows = _pick_tile_rows(
        rows, C, y_pred.dtype.itemsize, y_true.dtype.itemsize,
        max_rows=max_tile_rows)

    inter, pt_sum = _dice_sums_pallas(yp, yt, tile_rows, valid_elems=L)
    dice_ratio = (2.0 * inter + SMOOTH) / (pt_sum + SMOOTH)
    d_loss = 1.0 - dice_ratio

    if train_mode:
        return {"train_loss": d_loss, "dice_loss": d_loss}
    return {"dice_loss": d_loss}


def _reference_unet_loss(y_true, y_pred):
    seg_pred = jax.nn.softmax(y_pred.astype(jnp.float32), axis=1)
    pred1 = seg_pred[:, 1, :, :].reshape(-1)
    tflat = y_true.astype(jnp.float32).reshape(-1)
    inter = jnp.sum(pred1 * tflat)
    return 1.0 - (2.0 * inter + SMOOTH) / (jnp.sum(pred1) + jnp.sum(tflat) + SMOOTH)


if __name__ == "__main__":
    base_key = jax.random.PRNGKey(0)

    def _check(N, C, H, W, max_tile_rows=4096):
        k1, k2 = jax.random.split(jax.random.fold_in(base_key, N * 7 + C * 13 + H * 1000 + W))
        y_pred = jax.random.normal(k1, (N, C, H, W), dtype=jnp.float32)
        y_true = (jax.random.uniform(k2, (N, H, W)) > 0.5).astype(jnp.float32)

        out = unet_loss(y_true, y_pred, train_mode=True, max_tile_rows=max_tile_rows)
        out = jax.tree_util.tree_map(jax.block_until_ready, out)
        ref = _reference_unet_loss(y_true, y_pred)
        assert jnp.allclose(out["dice_loss"], ref, atol=1e-5, rtol=1e-5), (
            (N, C, H, W), out["dice_loss"], ref)
        assert jnp.allclose(out["train_loss"], out["dice_loss"])

        out_eval = unet_loss(y_true, y_pred, train_mode=False,
                             max_tile_rows=max_tile_rows)
        out_eval = jax.tree_util.tree_map(jax.block_until_ready, out_eval)
        assert jnp.allclose(out_eval["dice_loss"], ref, atol=1e-5, rtol=1e-5)

    # Base small case (single tile, no mask, no split).
    _check(2, 4, 16, 16)
    # Multi-tile + 2-way split, exact coverage (no mask).
    _check(2, 4, 64, 64, max_tile_rows=8)
    # Multi-tile + split + overhang + clamped duplicate tile (mask path).
    _check(2, 4, 48, 48, max_tile_rows=8)
    # H*W not a multiple of 128 -> zero-pad fallback + mask, N=1, C=2.
    _check(1, 2, 20, 20)

    print("KERNEL_OK")
</pallas_src>

<mosaic_0001>
module attributes {stable_mosaic.version = 11 : i64} {
  func.func @_dice_partial_kernel(%arg0: i32, %arg1: i32, %arg2: i32, %arg3: memref<1x4x2x128xf32, #tpu.memory_space<vmem>>, %arg4: memref<1x2x128xf32, #tpu.memory_space<vmem>>, %arg5: memref<1x1x1x1xf32, #tpu.memory_space<vmem>>, %arg6: memref<1x1x1x1xf32, #tpu.memory_space<vmem>>, %arg7: memref<2x128xf32, #tpu.memory_space<vmem>>, %arg8: memref<2x128xf32, #tpu.memory_space<vmem>>) attributes {dimension_semantics = [#tpu.dimension_semantics<parallel>, #tpu.dimension_semantics<parallel>, #tpu.dimension_semantics<arbitrary>], iteration_bounds = array<i64: 1, 2, 1>, scalar_prefetch = 0 : i64, scratch_operands = 2 : i64, tpu.core_type = #tpu.core_type<tc>, window_params = [{transform_indices = @transform_0, window_bounds = array<i64: 1, 4, 2, 128>}, {transform_indices = @transform_1, window_bounds = array<i64: 1, 2, 128>}, {transform_indices = @transform_2, window_bounds = array<i64: 1, 1, 1, 1>}, {transform_indices = @transform_3, window_bounds = array<i64: 1, 1, 1, 1>}]} {
    %c0_i32 = arith.constant 0 : i32
    %0 = arith.cmpi eq, %arg2, %c0_i32 : i32
    %1 = arith.extui %0 : i1 to i32
    %c0_i32_0 = arith.constant 0 : i32
    %2 = arith.cmpi ne, %1, %c0_i32_0 : i32
    scf.if %2 {
      %cst_27 = arith.constant 0.000000e+00 : f32
      %36 = vector.broadcast %cst_27 : f32 to vector<2x128xf32>
      %c0_28 = arith.constant 0 : index
      %c0_29 = arith.constant 0 : index
      %37 = vector.load %arg7[%c0_28, %c0_29] : memref<2x128xf32, #tpu.memory_space<vmem>>, vector<2x128xf32>
      tpu.vector_store %arg7[%c0_28, %c0_29], %36 {strides = array<i32>} : memref<2x128xf32, #tpu.memory_space<vmem>>, vector<2x128xf32>,
      %cst_30 = arith.constant 0.000000e+00 : f32
      %38 = vector.broadcast %cst_30 : f32 to vector<2x128xf32>
      %c0_31 = arith.constant 0 : index
      %c0_32 = arith.constant 0 : index
      %39 = vector.load %arg8[%c0_31, %c0_32] : memref<2x128xf32, #tpu.memory_space<vmem>>, vector<2x128xf32>
      tpu.vector_store %arg8[%c0_31, %c0_32], %38 {strides = array<i32>} : memref<2x128xf32, #tpu.memory_space<vmem>>, vector<2x128xf32>,
    } else {
    }
    %c0 = arith.constant 0 : index
    %c1 = arith.constant 1 : index
    %c0_1 = arith.constant 0 : index
    %c0_2 = arith.constant 0 : index
    %3 = vector.load %arg3[%c0, %c1, %c0_1, %c0_2] : memref<1x4x2x128xf32, #tpu.memory_space<vmem>>, vector<1x1x2x128xf32>
    %4 = vector.shape_cast %3 : vector<1x1x2x128xf32> to vector<2x128xf32>
    %c0_3 = arith.constant 0 : index
    %c0_4 = arith.constant 0 : index
    %c0_5 = arith.constant 0 : index
    %5 = vector.load %arg4[%c0_3, %c0_4, %c0_5] : memref<1x2x128xf32, #tpu.memory_space<vmem>>, vector<1x2x128xf32>
    %6 = vector.shape_cast %5 : vector<1x2x128xf32> to vector<2x128xf32>
    %cst = arith.constant 1.000000e+00 : f32
    %7 = vector.broadcast %cst : f32 to vector<2x128xf32>
    %c0_6 = arith.constant 0 : index
    %c0_7 = arith.constant 0 : index
    %c0_8 = arith.constant 0 : index
    %c0_9 = arith.constant 0 : index
    %8 = vector.load %arg3[%c0_6, %c0_7, %c0_8, %c0_9] : memref<1x4x2x128xf32, #tpu.memory_space<vmem>>, vector<1x1x2x128xf32>
    %9 = vector.shape_cast %8 : vector<1x1x2x128xf32> to vector<2x128xf32>
    %10 = arith.subf %9, %4 : vector<2x128xf32>
    %11 = math.exp %10 : vector<2x128xf32>
    %12 = arith.addf %7, %11 : vector<2x128xf32>
    %c0_10 = arith.constant 0 : index
    %c2 = arith.constant 2 : index
    %c0_11 = arith.constant 0 : index
    %c0_12 = arith.constant 0 : index
    %13 = vector.load %arg3[%c0_10, %c2, %c0_11, %c0_12] : memref<1x4x2x128xf32, #tpu.memory_space<vmem>>, vector<1x1x2x128xf32>
    %14 = vector.shape_cast %13 : vector<1x1x2x128xf32> to vector<2x128xf32>
    %15 = arith.subf %14, %4 : vector<2x128xf32>
    %16 = math.exp %15 : vector<2x128xf32>
    %17 = arith.addf %12, %16 : vector<2x128xf32>
    %c0_13 = arith.constant 0 : index
    %c3 = arith.constant 3 : index
    %c0_14 = arith.constant 0 : index
    %c0_15 = arith.constant 0 : index
    %18 = vector.load %arg3[%c0_13, %c3, %c0_14, %c0_15] : memref<1x4x2x128xf32, #tpu.memory_space<vmem>>, vector<1x1x2x128xf32>
    %19 = vector.shape_cast %18 : vector<1x1x2x128xf32> to vector<2x128xf32>
    %20 = arith.subf %19, %4 : vector<2x128xf32>
    %21 = math.exp %20 : vector<2x128xf32>
    %22 = arith.addf %17, %21 : vector<2x128xf32>
    %cst_16 = arith.constant 1.000000e+00 : f32
    %23 = vector.broadcast %cst_16 : f32 to vector<2x128xf32>
    %24 = arith.divf %23, %22 : vector<2x128xf32>
    %c0_17 = arith.constant 0 : index
    %c0_18 = arith.constant 0 : index
    %25 = vector.load %arg7[%c0_17, %c0_18] : memref<2x128xf32, #tpu.memory_space<vmem>>, vector<2x128xf32>
    %26 = arith.mulf %24, %6 : vector<2x128xf32>
    %27 = arith.addf %25, %26 : vector<2x128xf32>
    %c0_19 = arith.constant 0 : index
    %c0_20 = arith.constant 0 : index
    %28 = vector.load %arg7[%c0_19, %c0_20] : memref<2x128xf32, #tpu.memory_space<vmem>>, vector<2x128xf32>
    tpu.vector_store %arg7[%c0_19, %c0_20], %27 {strides = array<i32>} : memref<2x128xf32, #tpu.memory_space<vmem>>, vector<2x128xf32>,
    %c0_21 = arith.constant 0 : index
    %c0_22 = arith.constant 0 : index
    %29 = vector.load %arg8[%c0_21, %c0_22] : memref<2x128xf32, #tpu.memory_space<vmem>>, vector<2x128xf32>
    %30 = arith.addf %24, %6 : vector<2x128xf32>
    %31 = arith.addf %29, %30 : vector<2x128xf32>
    %c0_23 = arith.constant 0 : index
    %c0_24 = arith.constant 0 : index
    %32 = vector.load %arg8[%c0_23, %c0_24] : memref<2x128xf32, #tpu.memory_space<vmem>>, vector<2x128xf32>
    tpu.vector_store %arg8[%c0_23, %c0_24], %31 {strides = array<i32>} : memref<2x128xf32, #tpu.memory_space<vmem>>, vector<2x128xf32>,
    %c0_i32_25 = arith.constant 0 : i32
    %33 = arith.cmpi eq, %arg2, %c0_i32_25 : i32
    %34 = arith.extui %33 : i1 to i32
    %c0_i32_26 = arith.constant 0 : i32
    %35 = arith.cmpi ne, %34, %c0_i32_26 : i32
    scf.if %35 {
      %c0_27 = arith.constant 0 : index
      %c0_28 = arith.constant 0 : index
      %36 = vector.load %arg7[%c0_27, %c0_28] : memref<2x128xf32, #tpu.memory_space<vmem>>, vector<2x128xf32>
      %37 = vector.shape_cast %36 : vector<2x128xf32> to vector<1x2x128xf32>
      %cst_29 = arith.constant dense<0.000000e+00> : vector<1xf32>
      %38 = vector.multi_reduction <add>, %37, %cst_29 [1, 2] : vector<1x2x128xf32> to vector<1xf32>
      %39 = vector.shape_cast %38 : vector<1xf32> to vector<1x1x1xf32>
      %40 = vector.extract %39[0, 0, 0] : f32 from vector<1x1x1xf32>
      %41 = vector.broadcast %40 : f32 to vector<1x1xf32>
      %c0_30 = arith.constant 0 : index
      %c0_31 = arith.constant 0 : index
      %c0_32 = arith.constant 0 : index
      %c0_33 = arith.constant 0 : index
      %42 = vector.load %arg5[%c0_30, %c0_31, %c0_32, %c0_33] : memref<1x1x1x1xf32, #tpu.memory_space<vmem>>, vector<1x1x1x1xf32>
      %43 = vector.shape_cast %42 : vector<1x1x1x1xf32> to vector<1x1xf32>
      %44 = vector.shape_cast %41 : vector<1x1xf32> to vector<1x1x1x1xf32>
      tpu.vector_store %arg5[%c0_30, %c0_31, %c0_32, %c0_33], %44 {strides = array<i32>} : memref<1x1x1x1xf32, #tpu.memory_space<vmem>>, vector<1x1x1x1xf32>,
      %c0_34 = arith.constant 0 : index
      %c0_35 = arith.constant 0 : index
      %45 = vector.load %arg8[%c0_34, %c0_35] : memref<2x128xf32, #tpu.memory_space<vmem>>, vector<2x128xf32>
      %46 = vector.shape_cast %45 : vector<2x128xf32> to vector<1x2x128xf32>
      %cst_36 = arith.constant dense<0.000000e+00> : vector<1xf32>
      %47 = vector.multi_reduction <add>, %46, %cst_36 [1, 2] : vector<1x2x128xf32> to vector<1xf32>
      %48 = vector.shape_cast %47 : vector<1xf32> to vector<1x1x1xf32>
      %49 = vector.extract %48[0, 0, 0] : f32 from vector<1x1x1xf32>
      %50 = vector.broadcast %49 : f32 to vector<1x1xf32>
      %c0_37 = arith.constant 0 : index
      %c0_38 = arith.constant 0 : index
      %c0_39 = arith.constant 0 : index
      %c0_40 = arith.constant 0 : index
      %51 = vector.load %arg6[%c0_37, %c0_38, %c0_39, %c0_40] : memref<1x1x1x1xf32, #tpu.memory_space<vmem>>, vector<1x1x1x1xf32>
      %52 = vector.shape_cast %51 : vector<1x1x1x1xf32> to vector<1x1xf32>
      %53 = vector.shape_cast %50 : vector<1x1xf32> to vector<1x1x1x1xf32>
      tpu.vector_store %arg6[%c0_37, %c0_38, %c0_39, %c0_40], %53 {strides = array<i32>} : memref<1x1x1x1xf32, #tpu.memory_space<vmem>>, vector<1x1x1x1xf32>,
    } else {
    }
    return
  }
  func.func @transform_0(%arg0: i32, %arg1: i32, %arg2: i32) -> (i32, i32, i32, i32) {
    %c1_i32 = arith.constant 1 : i32
    %0 = arith.muli %arg0, %c1_i32 : i32
    %1 = arith.addi %0, %arg2 : i32
    %c0_i32 = arith.constant 0 : i32
    %2 = arith.minsi %1, %c0_i32 : i32
    %c0_i32_0 = arith.constant 0 : i32
    %c0_i32_1 = arith.constant 0 : i32
    %c0_i32_2 = arith.constant 0 : i32
    return %arg1, %c0_i32_0, %2, %c0_i32_1 : i32, i32, i32, i32
  }
  func.func @transform_1(%arg0: i32, %arg1: i32, %arg2: i32) -> (i32, i32, i32) {
    %c1_i32 = arith.constant 1 : i32
    %0 = arith.muli %arg0, %c1_i32 : i32
    %1 = arith.addi %0, %arg2 : i32
    %c0_i32 = arith.constant 0 : i32
    %2 = arith.minsi %1, %c0_i32 : i32
    %c0_i32_0 = arith.constant 0 : i32
    %c0_i32_1 = arith.constant 0 : i32
    return %arg1, %2, %c0_i32_0 : i32, i32, i32
  }
  func.func @transform_2(%arg0: i32, %arg1: i32, %arg2: i32) -> (i32, i32, i32, i32) {
    %c0_i32 = arith.constant 0 : i32
    %c0_i32_0 = arith.constant 0 : i32
    %c0_i32_1 = arith.constant 0 : i32
    return %arg0, %arg1, %c0_i32, %c0_i32_0 : i32, i32, i32, i32
  }
  func.func @transform_3(%arg0: i32, %arg1: i32, %arg2: i32) -> (i32, i32, i32, i32) {
    %c0_i32 = arith.constant 0 : i32
    %c0_i32_0 = arith.constant 0 : i32
    %c0_i32_1 = arith.constant 0 : i32
    return %arg0, %arg1, %c0_i32, %c0_i32_0 : i32, i32, i32, i32
  }
}

</mosaic_0001>

<bundles_post_ra>
// kernel: unet_loss.1
= control target key start
LH: loop header
LB: loop body
LE: loop exit
PB: predicated region body
PF: predicated region fallthrough
CT: control target
= control target key end

     0   :  { %s608_s12 = smov 0   ;;  %s610_s13 = smov 0   ;;  %s653_s0 = inlined_call_operand.vmem [shape: f32[2,4,2,128], index: 0, kind: input, shape index: {}]   ;;  %s654_s1 = inlined_call_operand.vmem [shape: f32[2,2,128], index: 1, kind: input, shape index: {}]   ;;  %s655_s2 = inlined_call_operand.vmem [shape: f32[1,2,1,1], index: 2, kind: output, shape index: {0}]   ;;  %s656_s3 = inlined_call_operand.vmem [shape: f32[1,2,1,1], index: 3, kind: output, shape index: {1}]  }
   0x1   :  { %s612_s14 = smov 0  }
   0x2 LB: > { %s29_s15 = sadd.s32 1, %s581_s13  ;;  %p516_p0 = scmp.ge.s32.totalorder %s585_s14, 1  ;;  %s585_s14 = sphi %s612_s14, %s14_s14   ;;  %s581_s13 = sphi %s610_s13, %s658_s13   ;;  %s577_s12 = sphi %s608_s12, %s657_s12  }
   0x3   : > { %p31_p1 = scmp.ge.s32.totalorder %s29_s15, 2  ;;  %p206_p2 = scmp.lt.s32.totalorder %s585_s14, 3 }
   0x5   : > { %s660_s15 = smov (%p31_p1, %s29_s15), 0  ;;  %p207_p3 = pnand %p516_p0, %p206_p2 }
   0x6   : > { %p258_p4 = scmp.lt.s32.totalorder (!%p207_p3), %s577_s12, 1 }
   0x7   : > { %210 = sbr.rel (%p207_p3) target bundleno = 251 (0xfb), region = 28 }
   0xc   : > { %v587_v0 = vmov 0.0   ;;  %s662_s12 = smov (!%p258_p4, %s577_s12), 1  ;;  %vm349_vm4 = vcmask 1041408   ;;  %vm361_vm5 = vcmask 0  }
   0xd   : > { %300 = vst [vmem:[#allocation2] sm:$0x3] %v587_v0  ;;  %s525_s16 = sshll.u32 %s662_s12, 3  ;;  %s519_s20 = sshll.u32 %s662_s12, 1 }
   0xe   : > { %301 = vst [vmem:[#allocation3] sm:$0x3] %v587_v0  ;;  %s265_s19 = scalar_lea.vmem %s653_s0, %s525_s16  ;;  %s278_s23 = scalar_lea.vmem %s654_s1, %s519_s20 }
   0xf   : > { %v520_v1 = vld [vmem:[%s265_s19 + $0x2] sm:$0x3]  ;;  %v305_v2 = vld [vmem:[%s265_s19] sm:$0x3]  ;;  %v521_v4 = vld [vmem:[%s265_s19 + $0x4] sm:$0x3]  ;;  %s288_s26 = scalar_lea.vmem %s655_s2, %s662_s12  ;;  %s295_s30 = scalar_lea.vmem %s656_s3, %s662_s12 }
  0x10   : > { %v306_v3 = vsub.f32 %v305_v2, %v520_v1  ;;  %v522_v5 = vld [vmem:[%s265_s19 + $0x6] sm:$0x3]  ;;  %v312_v6 = vsub.f32 %v521_v4, %v520_v1  ;;  %v304_v25 = vld [vmem:[%s278_s23] sm:$0x3] }
  0x11   : > { %v318_v7 = vsub.f32 %v522_v5, %v520_v1 }
  0x12   : > { %v307_v8 = vmul.f32 1.442695, %v306_v3  ;;  %v313_v9 = vmul.f32 1.442695, %v312_v6 }
  0x13   : > { %v319_v10 = vmul.f32 1.442695, %v318_v7 }
  0x14   : > { %555 = vpow2.f32 %v307_v8  ;;  %v337_v28 = vld [vmem:[#allocation2] sm:$0x3] }
  0x15   : > { %557 = vpow2.f32 %v313_v9  ;;  %v341_v29 = vld [vmem:[#allocation3] sm:$0x3] }
  0x16   : > { %559 = vpow2.f32 %v319_v10 }
  0x1a   : > { %v556_v11 = vpop.eup %555 }
  0x1b   : > { %v558_v12 = vpop.eup %557  ;;  %v309_v13 = vadd.f32 1.0, %v556_v11 }
  0x1c   : > { %v560_v14 = vpop.eup %559 }
  0x1d   : > { %v315_v15 = vadd.f32 %v558_v12, %v309_v13 }
  0x1f   : > { %v321_v16 = vadd.f32 %v560_v14, %v315_v15 }
  0x21   : > { %561 = vrcp.f32 %v321_v16  ;;  %v333_v19 = vand.u32 2147483648, %v321_v16  ;;  %vm327_vm0 = vweird.f32 %v321_v16  ;;  %v331_v21 = vand.u32 2147483647, %v321_v16 }
  0x23   : > { %v334_v23 = vor.u32 1.1754944e-38, %v333_v19  ;;  %vm332_vm3 = vcmp.eq.f32.partialorder %v331_v21, 8.507059e+37 }
  0x27   : > { %v562_v17 = vpop.eup %561 }
  0x28   : > { %v323_v18 = vmul.f32 %v562_v17, %v321_v16  ;;  %vm328_vm1 = vweird.f32 %v562_v17 }
  0x29   : > { %vm329_vm2 = vmor %vm327_vm0, %vm328_vm1 }
  0x2a   : > { %v324_v20 = vsub.f32 1.0, %v323_v18 }
  0x2c   : > { %v325_v22 = vmul.f32 %v562_v17, %v324_v20 }
  0x2e   : > { %v326_v24 = vadd.f32 %v562_v17, %v325_v22 }
  0x30   : > { %v330_v26 = vsel %vm329_vm2, %v562_v17, %v326_v24 }
  0x31   : > { %v335_v27 = vsel %vm332_vm3, %v334_v23, %v330_v26 }
  0x32   : > { %v338_v30 = vmul.f32 %v335_v27, %v304_v25  ;;  %v342_v31 = vadd.f32 %v335_v27, %v304_v25 }
  0x34   : > { %v339_v32 = vadd.f32 %v338_v30, %v337_v28  ;;  %v343_v33 = vadd.f32 %v342_v31, %v341_v29 }
  0x36   : > { %340 = vst [vmem:[#allocation2] sm:$0x3] %v339_v32 }
  0x37   : > { %344 = vst [vmem:[#allocation3] sm:$0x3] %v343_v33 }
  0x3d   : > { %v348_v34 = vld [vmem:[#allocation2] sm:$0x3] }
  0x3e   : > { %v350_v35 = vsel %vm349_vm4, %v348_v34, 0.0  ;;  %v363_v36 = vld [vmem:[#allocation3] sm:$0x3] }
  0x3f   : > { %351 = vadd.xlane.f32.xlu0 %v350_v35  ;;  %v364_v37 = vsel %vm349_vm4, %v363_v36, 0.0 }
  0x47   : > { %365 = vadd.xlane.f32.xlu0 %v364_v37 }
  0xb2   : > { %v352_v38 = vpop.xlane.xlu0 %351 }
  0xb3   : > { %v353_v39 = vrot.slane %v352_v38, 4 }
  0xb5   : > { %v354_v40 = vadd.f32 %v353_v39, %v352_v38 }
  0xb7   : > { %v355_v41 = vrot.slane %v354_v40, 2 }
  0xb9   : > { %v356_v42 = vadd.f32 %v355_v41, %v354_v40 }
  0xba   : > { %v366_v43 = vpop.xlane.xlu0 %365 }
  0xbb   : > { %v367_v44 = vrot.slane %v366_v43, 4  ;;  %v357_v45 = vrot.slane %v356_v42, 1 }
  0xbd   : > { %v368_v46 = vadd.f32 %v367_v44, %v366_v43  ;;  %v358_v47 = vadd.f32 %v357_v45, %v356_v42 }
  0xbf   : > { %v369_v48 = vrot.slane %v368_v46, 2  ;;  %526 = vpush %v358_v47 }
  0xc1   : > { %v370_v49 = vadd.f32 %v369_v48, %v368_v46 }
  0xc3   : > { %v371_v50 = vrot.slane %v370_v49, 1 }
  0xc5   : > { %v372_v51 = vadd.f32 %v371_v50, %v370_v49 }
  0xc7   : > { %528 = vpush %v372_v51 }
  0xf0   : > { %s527_s27 = spop %526 }
  0xf1   : > { %v360_v52 = vstv %s527_s27 }
  0xf2   : > { %362 = vst.msk [vmem:[%s288_s26] sm:$0x1] %vm361_vm5, %v360_v52 }
  0xf8   : > { %s529_s4 = spop %528 }
  0xf9   : > { %v374_v53 = vstv %s529_s4 }
  0xfa   : > { %375 = vst.msk [vmem:[%s295_s30] sm:$0x1] %vm361_vm5, %v374_v53 }
  0xfb PF: > { %s14_s14 = sadd.s32 1, %s585_s14   ;;  %s657_s12 = smov %s581_s13 }
  0xfc   : > { %p11_p5 = scmp.ge.s32.totalorder %s14_s14, 4   ;;  %s658_s13 = smov %s660_s15 }
  0xfe   :  { %13 = sbr.rel (!%p11_p5) target bundleno = 2 (0x2), region = 84 }

</bundles_post_ra>
